<compile_context>
chip_gen: v6e
topology: v6e:2x2x1
jax: 0.10.0
libtpu: 0.0.40
codegen_flags: <defaults>
</compile_context>

<pallas_src>
import math

import jax
import jax.numpy as jnp
from jax import lax
from jax.experimental import pallas as pl
from jax.experimental.pallas import tpu as pltpu


def _round_up(x, m):
    return ((x + m - 1) // m) * m


def _encoder_kernel(x_ref, tables_ref, out_ref):
    # x_ref:      (TILE_N, F)       int32    VMEM  (offsets already added)
    # tables_ref: (K_pad, E_pad)    bfloat16 VMEM  (flat, zero-padded tables)
    # out_ref:    (TILE_N, E_pad)   f32/bf16 VMEM  (lane-dense, E_pad % 128 == 0)
    tile_n, num_feats = x_ref.shape
    k_pad, _ = tables_ref.shape

    x = x_ref[...]                                              # (TILE_N, F)

    # Column ids along the flattened category axis (TPU needs >=2D iota).
    cat_ids = lax.broadcasted_iota(jnp.int32, (tile_n, k_pad), dimension=1)

    # Multi-hot LHS as a boolean OR across features (disjoint column ranges
    # for in-range indices), then a SINGLE cast to bf16.  F is small & static
    # -> unrolled VPU work: F compares + (F-1) ORs + 1 select.
    mask = cat_ids == x[:, 0:1]
    for f in range(1, num_feats):
        mask = jnp.logical_or(mask, cat_ids == x[:, f:f + 1])
    lhs = mask.astype(jnp.bfloat16)

    # Single lane-dense MXU contraction, f32 accumulation.
    out_ref[...] = jnp.dot(
        lhs, tables_ref[...], preferred_element_type=jnp.float32
    ).astype(out_ref.dtype)


def encoder_forward(x, tables_flat, offsets, *, emb_dim, tile_n=2048,
                    out_dtype=jnp.float32):
    """x: (N, F) int32; tables_flat: (K_pad, E_pad) bf16 -> (N, emb_dim).

    `offsets` are the cumulative per-feature row offsets into tables_flat.
    `out_dtype` may be set to jnp.bfloat16 to halve output HBM writeback if
    the consumer tolerates it (default f32 matches the PyTorch module).
    """
    n, num_feats = x.shape
    k_pad, e_pad = tables_flat.shape

    # Pre-add per-feature offsets (one fused XLA add) -> flat column indices.
    x_flat = (x.astype(jnp.int32) + offsets[None, :]).astype(jnp.int32)

    # Tile selection: big tiles amortize the ~0.35 us/grid-step overhead, but
    # keep >= 2 grid steps when N allows it so v7x's 2 TensorCores both get
    # work under ("parallel",) semantics.
    tile_n = min(tile_n, _round_up(n, 8))
    if n > 8:
        tile_n = min(tile_n, _round_up(pl.cdiv(n, 2), 8))
    n_pad = _round_up(n, tile_n)
    if n_pad != n:
        # Padded rows get flat index 0 (in-range); their outputs are sliced off.
        x_flat = jnp.pad(x_flat, ((0, n_pad - n), (0, 0)))

    grid = (n_pad // tile_n,)

    # TODO(synk): if K_pad * E_pad * 2B ever grows past a few MiB, add an
    # E-tiling second grid axis instead of keeping the table fully resident.
    out = pl.pallas_call(
        _encoder_kernel,
        out_shape=jax.ShapeDtypeStruct((n_pad, e_pad), out_dtype),
        grid=grid,
        in_specs=[
            pl.BlockSpec((tile_n, num_feats), lambda i: (i, 0)),
            # Constant index_map -> fully resident; single-buffered since a
            # second buffer for a never-changing block is pure VMEM waste.
            pl.BlockSpec((k_pad, e_pad), lambda i: (0, 0),
                         pipeline_mode=pl.Buffered(1)),
        ],
        out_specs=pl.BlockSpec((tile_n, e_pad), lambda i: (i, 0)),
        compiler_params=pltpu.CompilerParams(
            dimension_semantics=("parallel",),   # shard N over v7x's 2 TCs
            vmem_limit_bytes=32 * 1024 * 1024,   # safe on v7x's 64 MiB VMEM
        ),
    )(x_flat, tables_flat)

    return out[:n, :emb_dim]


def init_encoder_params(key, emb_dim, feature_dims, *, k_align=128, e_align=128):
    """Xavier-uniform per-feature tables, flattened with cumulative offsets,
    zero-padded to (K_pad, E_pad), stored in bf16.

    Returns (tables_flat_bf16 of shape (K_pad, E_pad), offsets int32 (F,)).
    Row offsets[f] + c holds Embedding_f(c); all other rows/columns are zero.
    """
    offsets = []
    off = 0
    for dim in feature_dims:
        offsets.append(off)
        off += dim
    k_pad = max(k_align, _round_up(off, k_align))
    e_pad = max(e_align, _round_up(emb_dim, e_align))

    flat = jnp.zeros((k_pad, e_pad), jnp.float32)
    for i, dim in enumerate(feature_dims):
        ki = jax.random.fold_in(key, i)
        bound = math.sqrt(6.0 / (dim + emb_dim))
        w = jax.random.uniform(ki, (dim, emb_dim), jnp.float32,
                               minval=-bound, maxval=bound)
        flat = flat.at[offsets[i]:offsets[i] + dim, :emb_dim].set(w)
    return flat.astype(jnp.bfloat16), jnp.asarray(offsets, jnp.int32)


def reference_forward(x, tables_flat_f32, offsets, emb_dim):
    """Pure-JAX reference: sum of per-feature embedding lookups."""
    out = 0
    for i in range(x.shape[1]):
        out = out + jnp.take(tables_flat_f32, x[:, i] + offsets[i], axis=0)
    return out[:, :emb_dim]


if __name__ == "__main__":
    key = jax.random.PRNGKey(0)

    emb_dim = 32
    feature_dims = (8, 5, 12, 6)     # 4 categorical features
    N = 16                           # number of atoms / nodes (demo size)

    tables_bf16, offsets = init_encoder_params(key, emb_dim, feature_dims)

    # Integer feature matrix x: (N, F), each column in [0, dim_f)
    cols = []
    for i, dim in enumerate(feature_dims):
        ki = jax.random.fold_in(jax.random.PRNGKey(42), i)
        cols.append(jax.random.randint(ki, (N,), 0, dim, dtype=jnp.int32))
    x = jnp.stack(cols, axis=1)      # (N, F) int32

    out = encoder_forward(x, tables_bf16, offsets, emb_dim=emb_dim)
    out = jax.block_until_ready(out)

    # Reference uses the same (bf16-quantized) weights so the comparison is
    # exact modulo f32 accumulation order.
    ref = reference_forward(x, tables_bf16.astype(jnp.float32), offsets, emb_dim)

    assert out.shape == (N, emb_dim)
    assert jnp.allclose(out, ref, atol=1e-5, rtol=1e-5)

    print("KERNEL_OK")
</pallas_src>

<mosaic_0001>
module attributes {stable_mosaic.version = 11 : i64} {
  func.func @_encoder_kernel(%arg0: i32, %arg1: memref<8x4xi32, #tpu.memory_space<vmem>>, %arg2: memref<128x128xbf16, #tpu.memory_space<vmem>>, %arg3: memref<8x128xf32, #tpu.memory_space<vmem>>) attributes {dimension_semantics = [#tpu.dimension_semantics<parallel>], iteration_bounds = array<i64: 2>, scalar_prefetch = 0 : i64, scratch_operands = 0 : i64, tpu.core_type = #tpu.core_type<tc>, window_params = [{transform_indices = @transform_0, window_bounds = array<i64: 8, 4>}, {pipeline_mode = #tpu.pipeline_mode<synchronous>, transform_indices = @transform_1, window_bounds = array<i64: 128, 128>}, {transform_indices = @transform_2, window_bounds = array<i64: 8, 128>}]} {
    %c0 = arith.constant 0 : index
    %c0_0 = arith.constant 0 : index
    %0 = vector.load %arg1[%c0, %c0_0] : memref<8x4xi32, #tpu.memory_space<vmem>>, vector<8x4xi32>
    %1 = tpu.iota {dimensions = array<i32: 1>} : vector<8x128xi32>
    %2 = vector.extract_strided_slice %0 {offsets = [0, 0], sizes = [8, 1], strides = [1, 1]} : vector<8x4xi32> to vector<8x1xi32>
    %3 = vector.broadcast %2 : vector<8x1xi32> to vector<8x128xi32>
    %4 = arith.cmpi eq, %1, %3 : vector<8x128xi32>
    %5 = vector.extract_strided_slice %0 {offsets = [0, 1], sizes = [8, 1], strides = [1, 1]} : vector<8x4xi32> to vector<8x1xi32>
    %6 = vector.broadcast %5 : vector<8x1xi32> to vector<8x128xi32>
    %7 = arith.cmpi eq, %1, %6 : vector<8x128xi32>
    %8 = arith.ori %4, %7 : vector<8x128xi1>
    %9 = vector.extract_strided_slice %0 {offsets = [0, 2], sizes = [8, 1], strides = [1, 1]} : vector<8x4xi32> to vector<8x1xi32>
    %10 = vector.broadcast %9 : vector<8x1xi32> to vector<8x128xi32>
    %11 = arith.cmpi eq, %1, %10 : vector<8x128xi32>
    %12 = arith.ori %8, %11 : vector<8x128xi1>
    %13 = vector.extract_strided_slice %0 {offsets = [0, 3], sizes = [8, 1], strides = [1, 1]} : vector<8x4xi32> to vector<8x1xi32>
    %14 = vector.broadcast %13 : vector<8x1xi32> to vector<8x128xi32>
    %15 = arith.cmpi eq, %1, %14 : vector<8x128xi32>
    %16 = arith.ori %12, %15 : vector<8x128xi1>
    %17 = arith.extui %16 : vector<8x128xi1> to vector<8x128xi32>
    %18 = arith.sitofp %17 : vector<8x128xi32> to vector<8x128xf32>
    %19 = arith.truncf %18 : vector<8x128xf32> to vector<8x128xbf16>
    %c0_1 = arith.constant 0 : index
    %c0_2 = arith.constant 0 : index
    %20 = vector.load %arg2[%c0_1, %c0_2] : memref<128x128xbf16, #tpu.memory_space<vmem>>, vector<128x128xbf16>
    %cst = arith.constant dense<0.000000e+00> : vector<8x128xf32>
    %21 = tpu.matmul %19, %20, %cst {dimension_numbers = #tpu.dot_dimension_numbers<[1], [0], [0], [1], [0, 0, 1, 1], [], []>} : vector<8x128xbf16>, vector<128x128xbf16>, vector<8x128xf32> -> vector<8x128xf32>
    %c0_3 = arith.constant 0 : index
    %c0_4 = arith.constant 0 : index
    %22 = vector.load %arg3[%c0_3, %c0_4] : memref<8x128xf32, #tpu.memory_space<vmem>>, vector<8x128xf32>
    tpu.vector_store %arg3[%c0_3, %c0_4], %21 {strides = array<i32>} : memref<8x128xf32, #tpu.memory_space<vmem>>, vector<8x128xf32>,
    return
  }
  func.func @transform_0(%arg0: i32) -> (i32, i32) {
    %c0_i32 = arith.constant 0 : i32
    %c0_i32_0 = arith.constant 0 : i32
    return %arg0, %c0_i32 : i32, i32
  }
  func.func @transform_1(%arg0: i32) -> (i32, i32) {
    %c0_i32 = arith.constant 0 : i32
    %c0_i32_0 = arith.constant 0 : i32
    %c0_i32_1 = arith.constant 0 : i32
    return %c0_i32, %c0_i32_0 : i32, i32
  }
  func.func @transform_2(%arg0: i32) -> (i32, i32) {
    %c0_i32 = arith.constant 0 : i32
    %c0_i32_0 = arith.constant 0 : i32
    return %arg0, %c0_i32 : i32, i32
  }
}

</mosaic_0001>

<bundles_post_ra>
// kernel: tpu_custom_call.1
= control target key start
LH: loop header
LB: loop body
LE: loop exit
PB: predicated region body
PF: predicated region fallthrough
CT: control target
= control target key end

     0   :  { %7 = vsyncpa [#allocation3], 0  ;;  %s729_s0 = inlined_call_operand.vmem [shape: s32[16,4], index: 0, kind: input, shape index: {}]   ;;  %s730_s1 = inlined_call_operand.hbm [shape: bf16[128,128], index: 1, kind: input, shape index: {}]   ;;  %s731_s2 = inlined_call_operand.hbm [shape: f32[16,128], index: 2, kind: output, shape index: {}]  }
   0x1   :  { %8 = vsyncpa [#allocation4], 0 }
   0x2   :  { %10 = vsyncpa [#allocation4 + $0x1], 0  ;;  %s612_s9 = smov 0   ;;  %s614_s10 = smov 0  }
   0x3   :  { %s616_s11 = smov 0   ;;  %s618_s12 = smov 0  }
   0x4 LB: > { %s633_s13 = sadd.s32 4294967295, %s584_s12   ;;  %s370_s14 = sadd.s32 4294967294, %s584_s12   ;;  %s584_s12 = sphi %s618_s12, %s739_s12   ;;  %s580_s11 = sphi %s616_s11, %s738_s11   ;;  %s576_s10 = sphi %s614_s10, %s737_s10   ;;  %s572_s9 = sphi %s612_s9, %s736_s9  }
   0x5   : > { %s637_s15 = sadd.s32 1, %s584_s12   ;;  %s70_s16 = sadd.s32 1, %s580_s11 }
   0x6   : > { %s67_s17 = ssub.s32 %s584_s12, %s637_s15  ;;  %p80_p0 = scmp.ne.s32.totalorder %s580_s11, %s576_s10 }
   0x7   : > { %p68_p1 = scmp.eq.s32.totalorder %s67_s17, 0  ;;  %p81_p2 = scmp.eq.s32.totalorder %s633_s13, 1 }
   0x8   : > { %p86_p3 = scmp.ne.s32.totalorder %s576_s10, %s572_s9  ;;  %p87_p4 = scmp.eq.s32.totalorder %s370_s14, 1 }
   0x9   : > { %s648_s18 = scalar_select %p68_p1, %s580_s11, %s70_s16  }
   0xa   : > { %p650_p5 = por %p81_p2, %p80_p0  ;;  %p654_p6 = por %p87_p4, %p86_p3 }
   0xb   : > { %p371_p7 = scmp.ge.s32.totalorder %s584_s12, 1  ;;  %p94_p8 = scmp.lt.s32.totalorder %s584_s12, 3 }
   0xc   : > { %s733_s20 = scalar_select %p654_p6, 1, 0 }
   0xd   : > { %p436_p9 = scmp.eq.s32.totalorder %s633_s13, 0  ;;  %p661_p10 = pnand %p371_p7, %p94_p8 }
   0xe   : > { %s586_s22 = smov [#allocation2]  }
   0xf   : > { %s106_s23 = sshll.u32 %s586_s22, 4  ;;  %p428_p11 = pneg %p661_p10  ;;  %s107_s23 = int_to_ptr.vmem [resolvable:$true] %s106_s23 }
  0x10   : > { %s505_s24 = scalar_lea.vmem %s107_s23, 1024  ;;  %p513_p3 = scmp.lt.s32.totalorder %s107_s23, %s107_s23 }
  0x11   : > { %p429_p12 = pnand %p436_p9, %p428_p11  ;;  %p506_p0 = scmp.ne.s32.totalorder %s107_s23, %s505_s24 }
  0x12   : > { %p514_p4 = scmp.lt.s32.totalorder %s505_s24, %s505_s24 }
  0x13   : > { %p496_p13 = pneg %p429_p12 }
  0x14   : > { %p515_p6 = por %p514_p4, %p513_p3 }
  0x15   : > { %p508_p1 = pnand %p506_p0, %p496_p13 }
  0x17   : > { %p509_p2 = pneg %p508_p1 }
  0x19   : > { %p516_p7 = pnand %p515_p6, %p509_p2 }
  0x1b   : > { %519 = shalt.err (!%p516_p7)
}
  0x1c   : > { %s587_s25 = smov 64   ;;  %s588_s26 = smov 4  }
  0x1d   : > { %431 = dma.hbm_to_vmem [thread:$0]  (!%p429_p12), %s730_s1, 1024, %s107_s23, [#allocation3], %s587_s25, %s587_s25, %s588_s26  }
  0x1e   : > { %129 = sbr.rel (%p661_p10) target bundleno = 386 (0x182), region = 28 }
  0x23   : > { %563 = dma.done.wait (%p436_p9), [#allocation3], 1024  }
  0x24   : > { %565 = vsyncadd (%p436_p9), [#allocation3], 4294966272  ;;  %p150_p8 = scmp.lt.s32.totalorder %s633_s13, 1  ;;  %v589_v0 = vmov 0   ;;  %v590_v1 = vmov 2   ;;  %v591_v2 = vmov 0.0   ;;  %v156_v14 = vlaneseq }
  0x25   : > { %481 = vset.pattern.permute.xlu0 %v589_v0  ;;  %483 = vset.pattern.permute.xlu1 %v590_v1  ;;  %v486_v4 = vld [vmem:[#allocation2 + $0x38] sm:$0xff]   ;;  %v487_v5 = vld [vmem:[#allocation2 + $0x30] sm:$0xff]   ;;  %v592_v6 = vmov 1   ;;  %v593_v7 = vmov 3   ;;  %v488_v8 = vld [vmem:[#allocation2 + $0x28] sm:$0xff]   ;;  %vm594_vm0 = vmmov 0  }
  0x26   : > { %s151_s29 = scalar_select %p150_p8, %s633_s13, 1  ;;  %402 = vmatprep.subr.bf16.mxu0 %v591_v2  ;;  %418 = vmatprep.mubr.msk.bf16.mxu0 %vm594_vm0, %v591_v2  ;;  %v489_v9 = vld [vmem:[#allocation2 + $0x20] sm:$0xff]   ;;  %v490_v10 = vld [vmem:[#allocation2 + $0x18] sm:$0xff]   ;;  %v491_v11 = vld [vmem:[#allocation2 + $0x10] sm:$0xff]   ;;  %v157_v17 = vand.u32 127, %v156_v14 }
  0x27   : > { %403 = vmatpush3.bf16.msra.mxu0 %v486_v4  ;;  %v492_v12 = vld [vmem:[#allocation2 + $0x8] sm:$0xff]   ;;  %v493_v13 = vld [vmem:[#allocation2] sm:$0xff]   ;;  %v595_v20 = vmov 1.0|1.0   ;;  %s147_s6 = sand.u32 1, %s576_s10   ;;  %s390_s16 = sshll.u32 %s633_s13, 7 }
  0x28   : > { %s377_s30 = sshll.u32 %s151_s29, 3  ;;  %404 = vmatprep.subr.bf16.mxu0 %v591_v2  ;;  %s376_s7 = sshll.u32 %s147_s6, 3 }
  0x29   : > { %s153_s5 = scalar_lea.vmem %s729_s0, %s377_s30  ;;  %s149_s8 = scalar_lea.vmem [#allocation5], %s376_s7 }
  0x2a   : > { %v155_v3 = vld [vmem:[%s153_s5] sm:$0xff]  ;;  %s299_s14 = sshll.u32 %s149_s8, 4  ;;  %s690_s22 = scalar_lea.hbm %s731_s2, %s390_s16  ;;  %s685_s14 = int_to_ptr.vmem [resolvable:$true] %s299_s14 }
  0x2b   : > { %159 = vperm.xlu0 %481, %v155_v3   ;;  %168 = vperm.xlu1 %483, %v155_v3   ;;  %s286_s23 = scalar_lea.sflag [#allocation4], %s147_s6  ;;  %s520_s24 = scalar_lea.vmem %s685_s14, 128 }
  0x2c   : > { %405 = vmatpush3.bf16.msra.mxu0 %v487_v5  ;;  %p521_p6 = scmp.ne.s32.totalorder %s685_s14, %s520_s24  ;;  %s596_s13 = smov [#allocation5]  }
  0x2d   : > { %406 = vmatprep.subr.bf16.mxu0 %v591_v2  ;;  %s524_s25 = sshll.u32 %s596_s13, 4  ;;  %s525_s25 = int_to_ptr.vmem [resolvable:$false] %s524_s25 }
  0x2e   : > { %p522_p9 = pnand %p521_p6, %p650_p5  ;;  %s526_s26 = scalar_lea.vmem %s525_s25, 256 }
  0x2f   : > { %482 = vset.pattern.permute.xlu0 %v592_v6  ;;  %484 = vset.pattern.permute.xlu1 %v593_v7  ;;  %p527_p11 = scmp.lt.s32.totalorder %s685_s14, %s525_s25  ;;  %p528_p12 = scmp.lt.s32.totalorder %s526_s26, %s520_s24 }
  0x30   : > { %163 = vperm.xlu0 %482, %v155_v3   ;;  %173 = vperm.xlu1 %484, %v155_v3   ;;  %p523_p10 = pneg %p522_p9 }
  0x31   : > { %407 = vmatpush3.bf16.msra.mxu0 %v488_v8  ;;  %p529_p13 = por %p528_p12, %p527_p11 }
  0x32   : > { %408 = vmatprep.subr.bf16.mxu0 %v591_v2 }
  0x33   : > { %p530_p0 = pnand %p529_p13, %p523_p10 }
  0x34   : > { %485 = vset.pattern.permute.xlu0 %v593_v7 }
  0x35   : > { %409 = vmatpush3.bf16.msra.mxu0 %v489_v9 }
  0x36   : > { %410 = vmatprep.subr.bf16.mxu0 %v591_v2 }
  0x39   : > { %411 = vmatpush3.bf16.msra.mxu0 %v490_v10 }
  0x3a   : > { %412 = vmatprep.subr.bf16.mxu0 %v591_v2 }
  0x3d   : > { %413 = vmatpush3.bf16.msra.mxu0 %v491_v11 }
  0x3e   : > { %414 = vmatprep.subr.bf16.mxu0 %v591_v2 }
  0x41   : > { %415 = vmatpush3.bf16.msra.mxu0 %v492_v12 }
  0x42   : > { %416 = vmatprep.subr.bf16.mxu0 %v591_v2 }
  0x45   : > { %417 = vmatpush3.bf16.msra.mxu0 %v493_v13 }
  0xa6   : > { %v160_v15 = vpop.permute.xlu0 %159  ;;  %v169_v16 = vpop.permute.xlu1 %168 }
  0xa7   : > { %vm161_vm1 = vcmp.eq.s32.totalorder %v157_v17, %v160_v15  ;;  %vm170_vm4 = vcmp.eq.s32.totalorder %v157_v17, %v169_v16 }
  0xab   : > { %v164_v18 = vpop.permute.xlu0 %163  ;;  %v174_v19 = vpop.permute.xlu1 %173 }
  0xac   : > { %vm165_vm2 = vcmp.eq.s32.totalorder %v157_v17, %v164_v18  ;;  %vm175_vm3 = vcmp.eq.s32.totalorder %v157_v17, %v174_v19 }
  0xad   : > { %vm166_vm5 = vmor %vm161_vm1, %vm165_vm2 }
  0xae   : > { %vm171_vm6 = vmor %vm166_vm5, %vm170_vm4 }
  0xaf   : > { %vm176_vm7 = vmor %vm171_vm6, %vm175_vm3 }
  0xb0   : > { %vm387_vm8 = vmpackc.low %vm176_vm7, %vm176_vm7 }
  0xb1   : > { %419 = vmatmul.mubr.msk.bf16.vlgmr.msra.gmra.mxu0 %vm387_vm8, %v595_v20 }
 0x171   : > { %v278_v21 = vpop.f32.mrf.mxu0 }
 0x172   : > { %284 = vst [vmem:[%s149_s8] sm:$0xff] %v278_v21 }
 0x173   : > { %v420_v22 = vpop.f32.mrf.mxu0 }
 0x174   : > { %533 = shalt.err (!%p530_p0)
}
 0x175   : > { %s534_s27 = scalar_lea.hbm %s690_s22, 128  ;;  %s538_s30 = scalar_lea.hbm %s731_s2, 256 }
 0x176   : > { %p535_p1 = scmp.ne.s32.totalorder %s690_s22, %s534_s27  ;;  %p539_p4 = scmp.lt.s32.totalorder %s690_s22, %s731_s2 }
 0x177   : > { %p540_p7 = scmp.lt.s32.totalorder %s538_s30, %s534_s27 }
 0x178   : > { %p536_p2 = pnand %p535_p1, %p650_p5 }
 0x179   : > { %p541_p8 = por %p540_p7, %p539_p4 }
 0x17a   : > { %p537_p3 = pneg %p536_p2 }
 0x17c   : > { %p542_p6 = pnand %p541_p8, %p537_p3 }
 0x17e   : > { %545 = shalt.err (!%p542_p6)
}
 0x17f   : > { %426 = dma.vmem_to_hbm [thread:$0]  (%p650_p5), %s685_s14, 128, %s690_s22, %s286_s23   ;;  %v281_v23 = vpop.f32.mrf.mxu0 }
 0x181   : > { %v421_v24 = vpop.f32.mrf.mxu0 }
 0x182 PF: > { %p438_p9 = scmp.ge.s32.totalorder %s584_s12, 2  ;;  %s311_s5 = sand.u32 1, %s572_s9  }
 0x183   : > { %p735_p10 = scmp.ne.s32.totalorder %s733_s20, 0  ;;  %s312_s6 = scalar_lea.sflag [#allocation4], %s311_s5 }
 0x185   : > { %p433_p11 = pnand %p438_p9, %p735_p10 }
 0x187   : > { %p434_p12 = pneg %p433_p11 }
 0x189   : > { %567 = dma.done.wait (%p434_p12), %s312_s6, 128  }
 0x18a   : > { %569 = vsyncadd (%p434_p12), %s312_s6, 4294967168  ;;  %p13_p5 = scmp.ge.s32.totalorder %s637_s15, 4   ;;  %s736_s9 = smov %s576_s10 }
 0x18b   : > { %s737_s10 = smov %s580_s11  ;;  %s738_s11 = smov %s648_s18 }
 0x18c   : > { %s739_s12 = smov %s637_s15  ;;  %15 = sbr.rel (!%p13_p5) target bundleno = 4 (0x4), region = 68 }
 0x191   :  { %317 = vsyncpa [#allocation3], 1 }
 0x192   :  { %319 = vsyncpa [#allocation3 + $0x1], 1 }
 0x193   :  { %320 = vsyncpa [#allocation4], 1 }
 0x194   :  { %322 = vsyncpa [#allocation4 + $0x1], 1 }

</bundles_post_ra>
